<compile_context>
chip_gen: v7x
topology: tpu7x:2x2x1
jax: 0.10.0
libtpu: 0.0.40
codegen_flags: <defaults>
</compile_context>

<pallas_src>
import jax
import jax.numpy as jnp
from jax.experimental import pallas as pl
from jax.experimental.pallas import tpu as pltpu


def mlp_kernel(xt_ref, w1_ref, b1_ref, w2_ref, b2_ref, w3_ref, b3_ref, o_ref):
    # xt_ref: (d, TB) bf16 — one batch tile, batch on the lane axis.
    xt = xt_ref[...]

    # Layer 1: h1^T = relu(W1 @ x^T + b1)          (q1, TB), f32 accumulation.
    h1 = jnp.dot(w1_ref[...], xt, preferred_element_type=jnp.float32)
    h1 = jnp.maximum(h1 + b1_ref[...], 0.0)

    # Layer 2: h2^T = relu(W2 @ h1^T + b2)         (q2, TB), bf16 MXU inputs.
    h2 = jnp.dot(w2_ref[...], h1.astype(jnp.bfloat16),
                 preferred_element_type=jnp.float32)
    h2 = jnp.maximum(h2 + b2_ref[...], 0.0)

    # Layer 3 (out_features=1): VPU multiply + cross-sublane reduce; result is
    # a lane-dense (1, TB) row.
    z = jnp.sum(h2 * w3_ref[...], axis=0, keepdims=True) + b3_ref[...]

    # Sigmoid: exp + approximate reciprocal, both on the otherwise-idle EUP.
    o_ref[...] = pl.reciprocal(1.0 + jnp.exp(-z), approx=True)


def neural_net_forward(x, w1, b1, w2, b2, w3, b3, *, tb=512):
    """Forward pass of NeuralNet.

    x:  (B, d) float32
    w1: (q1, d), b1: (q1,)   -- PyTorch nn.Linear layout (out_features, in_features)
    w2: (q2, q1), b2: (q2,)
    w3: (1, q2),  b3: (1,)
    Returns (B, 1) float32.
    """
    B, d = x.shape
    q1 = w1.shape[0]
    q2 = w2.shape[0]
    assert w1.shape == (q1, d), "w1 must be PyTorch layout (q1, d)"
    assert w2.shape == (q2, q1), "w2 must be PyTorch layout (q2, q1)"
    assert w3.shape == (1, q2), "w3 must be PyTorch layout (1, q2)"
    assert b1.shape == (q1,) and b2.shape == (q2,) and b3.shape == (1,)

    # Batch tile: lane-aligned (multiple of 128), capped well inside v7x's
    # 64 MiB VMEM (x tile = d*TB*2B, double-buffered, + ~tens of KB of
    # resident weights and f32 intermediates).
    tb = max(128, min(int(tb), 2048))
    tb = (tb // 128) * 128
    b_pad = pl.cdiv(B, tb) * tb
    grid = (b_pad // tb,)

    # Transpose batch onto the lane axis, pad to a tile multiple, cast to bf16.
    xt = jnp.pad(x.T.astype(jnp.bfloat16), ((0, 0), (0, b_pad - B)))
    w1b = w1.astype(jnp.bfloat16)
    w2b = w2.astype(jnp.bfloat16)
    w3c = w3.T.astype(jnp.float32)              # (q2, 1) column, stays on VPU
    b1c = b1.reshape(q1, 1).astype(jnp.float32)
    b2c = b2.reshape(q2, 1).astype(jnp.float32)
    b3c = b3.reshape(1, 1).astype(jnp.float32)

    const = lambda i: (0, 0)   # weights/biases resident across all grid steps

    out = pl.pallas_call(
        mlp_kernel,
        out_shape=jax.ShapeDtypeStruct((1, b_pad), jnp.float32),
        grid_spec=pltpu.PrefetchScalarGridSpec(
            num_scalar_prefetch=0,
            grid=grid,
            in_specs=[
                pl.BlockSpec((d, tb), lambda i: (0, i)),   # x^T batch tile
                pl.BlockSpec((q1, d), const),              # W1
                pl.BlockSpec((q1, 1), const),              # b1
                pl.BlockSpec((q2, q1), const),             # W2
                pl.BlockSpec((q2, 1), const),              # b2
                pl.BlockSpec((q2, 1), const),              # w3 (column)
                pl.BlockSpec((1, 1), const),               # b3
            ],
            out_specs=pl.BlockSpec((1, tb), lambda i: (0, i)),
        ),
        compiler_params=pltpu.CompilerParams(
            dimension_semantics=("parallel",)),
    )(xt, w1b, b1c, w2b, b2c, w3c, b3c)

    return out[0, :B].reshape(B, 1)


def init_linear(key, fan_in, fan_out):
    """PyTorch nn.Linear default init (uniform ±1/sqrt(fan_in)), PyTorch layout."""
    kw, kb = jax.random.split(key)
    bound = 1.0 / jnp.sqrt(jnp.float32(fan_in))
    w = jax.random.uniform(kw, (fan_out, fan_in), jnp.float32, -bound, bound)
    b = jax.random.uniform(kb, (fan_out,), jnp.float32, -bound, bound)
    return w, b


def reference_forward(x, w1, b1, w2, b2, w3, b3):
    """Pure-JAX reference with the same bf16 casts the kernel applies."""
    f32 = jnp.float32
    xb = x.astype(jnp.bfloat16).astype(f32)
    w1b = w1.astype(jnp.bfloat16).astype(f32)
    w2b = w2.astype(jnp.bfloat16).astype(f32)
    h1 = jnp.maximum(xb @ w1b.T + b1, 0.0)
    h1b = h1.astype(jnp.bfloat16).astype(f32)
    h2 = jnp.maximum(h1b @ w2b.T + b2, 0.0)
    z = h2 @ w3.T + b3
    return jax.nn.sigmoid(z)


if __name__ == "__main__":
    # Small shapes consistent with the module: d input features, q1/q2 hidden.
    # B=300 (not a tile multiple) exercises the padding path; tb=128 gives a
    # 3-step batch grid.
    B, d, q1, q2 = 300, 32, 64, 32

    key = jax.random.PRNGKey(0)
    kx, k1, k2, k3 = jax.random.split(key, 4)

    x = jax.random.normal(kx, (B, d), jnp.float32)
    w1, b1 = init_linear(k1, d, q1)
    w2, b2 = init_linear(k2, q1, q2)
    w3, b3 = init_linear(k3, q2, 1)

    out = neural_net_forward(x, w1, b1, w2, b2, w3, b3, tb=128)
    out = jax.block_until_ready(out)

    ref = reference_forward(x, w1, b1, w2, b2, w3, b3)
    assert out.shape == (B, 1)
    assert jnp.allclose(out, ref, atol=5e-3, rtol=5e-3), (
        float(jnp.max(jnp.abs(out - ref))))

    print("KERNEL_OK")
</pallas_src>

<mosaic_0001>
module attributes {stable_mosaic.version = 11 : i64} {
  func.func @mlp_kernel(%arg0: i32, %arg1: memref<32x128xbf16, #tpu.memory_space<vmem>>, %arg2: memref<64x32xbf16, #tpu.memory_space<vmem>>, %arg3: memref<64x1xf32, #tpu.memory_space<vmem>>, %arg4: memref<32x64xbf16, #tpu.memory_space<vmem>>, %arg5: memref<32x1xf32, #tpu.memory_space<vmem>>, %arg6: memref<32x1xf32, #tpu.memory_space<vmem>>, %arg7: memref<1x1xf32, #tpu.memory_space<vmem>>, %arg8: memref<1x128xf32, #tpu.memory_space<vmem>>) attributes {dimension_semantics = [#tpu.dimension_semantics<parallel>], iteration_bounds = array<i64: 3>, scalar_prefetch = 0 : i64, scratch_operands = 0 : i64, tpu.core_type = #tpu.core_type<tc>, window_params = [{transform_indices = @transform_0, window_bounds = array<i64: 32, 128>}, {pipeline_mode = #tpu.pipeline_mode<synchronous>, transform_indices = @transform_1, window_bounds = array<i64: 64, 32>}, {pipeline_mode = #tpu.pipeline_mode<synchronous>, transform_indices = @transform_2, window_bounds = array<i64: 64, 1>}, {pipeline_mode = #tpu.pipeline_mode<synchronous>, transform_indices = @transform_3, window_bounds = array<i64: 32, 64>}, {pipeline_mode = #tpu.pipeline_mode<synchronous>, transform_indices = @transform_4, window_bounds = array<i64: 32, 1>}, {pipeline_mode = #tpu.pipeline_mode<synchronous>, transform_indices = @transform_5, window_bounds = array<i64: 32, 1>}, {pipeline_mode = #tpu.pipeline_mode<synchronous>, transform_indices = @transform_6, window_bounds = array<i64: 1, 1>}, {transform_indices = @transform_7, window_bounds = array<i64: 1, 128>}]} {
    %c0 = arith.constant 0 : index
    %c0_0 = arith.constant 0 : index
    %0 = vector.load %arg1[%c0, %c0_0] : memref<32x128xbf16, #tpu.memory_space<vmem>>, vector<32x128xbf16>
    %c0_1 = arith.constant 0 : index
    %c0_2 = arith.constant 0 : index
    %1 = vector.load %arg2[%c0_1, %c0_2] : memref<64x32xbf16, #tpu.memory_space<vmem>>, vector<64x32xbf16>
    %cst = arith.constant dense<0.000000e+00> : vector<64x128xf32>
    %2 = tpu.matmul %1, %0, %cst {dimension_numbers = #tpu.dot_dimension_numbers<[1], [0], [0], [1], [0, 0, 1, 1], [], []>} : vector<64x32xbf16>, vector<32x128xbf16>, vector<64x128xf32> -> vector<64x128xf32>
    %c0_3 = arith.constant 0 : index
    %c0_4 = arith.constant 0 : index
    %3 = vector.load %arg3[%c0_3, %c0_4] : memref<64x1xf32, #tpu.memory_space<vmem>>, vector<64x1xf32>
    %4 = vector.broadcast %3 : vector<64x1xf32> to vector<64x128xf32>
    %5 = arith.addf %2, %4 : vector<64x128xf32>
    %cst_5 = arith.constant 0.000000e+00 : f32
    %6 = vector.broadcast %cst_5 : f32 to vector<64x128xf32>
    %7 = arith.maximumf %5, %6 : vector<64x128xf32>
    %c0_6 = arith.constant 0 : index
    %c0_7 = arith.constant 0 : index
    %8 = vector.load %arg4[%c0_6, %c0_7] : memref<32x64xbf16, #tpu.memory_space<vmem>>, vector<32x64xbf16>
    %9 = arith.truncf %7 : vector<64x128xf32> to vector<64x128xbf16>
    %cst_8 = arith.constant dense<0.000000e+00> : vector<32x128xf32>
    %10 = tpu.matmul %8, %9, %cst_8 {dimension_numbers = #tpu.dot_dimension_numbers<[1], [0], [0], [1], [0, 0, 1, 1], [], []>} : vector<32x64xbf16>, vector<64x128xbf16>, vector<32x128xf32> -> vector<32x128xf32>
    %c0_9 = arith.constant 0 : index
    %c0_10 = arith.constant 0 : index
    %11 = vector.load %arg5[%c0_9, %c0_10] : memref<32x1xf32, #tpu.memory_space<vmem>>, vector<32x1xf32>
    %12 = vector.broadcast %11 : vector<32x1xf32> to vector<32x128xf32>
    %13 = arith.addf %10, %12 : vector<32x128xf32>
    %cst_11 = arith.constant 0.000000e+00 : f32
    %14 = vector.broadcast %cst_11 : f32 to vector<32x128xf32>
    %15 = arith.maximumf %13, %14 : vector<32x128xf32>
    %c0_12 = arith.constant 0 : index
    %c0_13 = arith.constant 0 : index
    %16 = vector.load %arg6[%c0_12, %c0_13] : memref<32x1xf32, #tpu.memory_space<vmem>>, vector<32x1xf32>
    %17 = vector.broadcast %16 : vector<32x1xf32> to vector<32x128xf32>
    %18 = arith.mulf %15, %17 : vector<32x128xf32>
    %cst_14 = arith.constant dense<0.000000e+00> : vector<128xf32>
    %19 = vector.multi_reduction <add>, %18, %cst_14 [0] : vector<32x128xf32> to vector<128xf32>
    %20 = vector.shape_cast %19 : vector<128xf32> to vector<1x128xf32>
    %c0_15 = arith.constant 0 : index
    %c0_16 = arith.constant 0 : index
    %21 = vector.load %arg7[%c0_15, %c0_16] : memref<1x1xf32, #tpu.memory_space<vmem>>, vector<1x1xf32>
    %22 = vector.broadcast %21 : vector<1x1xf32> to vector<1x128xf32>
    %23 = arith.addf %20, %22 : vector<1x128xf32>
    %cst_17 = arith.constant 0.000000e+00 : f32
    %24 = vector.broadcast %cst_17 : f32 to vector<1x128xf32>
    %25 = arith.subf %24, %23 : vector<1x128xf32>
    %26 = math.exp %25 : vector<1x128xf32>
    %cst_18 = arith.constant 1.000000e+00 : f32
    %27 = vector.broadcast %cst_18 : f32 to vector<1x128xf32>
    %28 = arith.addf %27, %26 : vector<1x128xf32>
    %29 = tpu.reciprocal %28 {approx = true} : vector<1x128xf32> -> vector<1x128xf32>
    %c0_19 = arith.constant 0 : index
    %c0_20 = arith.constant 0 : index
    %30 = vector.load %arg8[%c0_19, %c0_20] : memref<1x128xf32, #tpu.memory_space<vmem>>, vector<1x128xf32>
    tpu.vector_store %arg8[%c0_19, %c0_20], %29 {strides = array<i32>} : memref<1x128xf32, #tpu.memory_space<vmem>>, vector<1x128xf32>,
    return
  }
  func.func @transform_0(%arg0: i32) -> (i32, i32) {
    %c0_i32 = arith.constant 0 : i32
    %c0_i32_0 = arith.constant 0 : i32
    return %c0_i32, %arg0 : i32, i32
  }
  func.func @transform_1(%arg0: i32) -> (i32, i32) {
    %c0_i32 = arith.constant 0 : i32
    %c0_i32_0 = arith.constant 0 : i32
    %c0_i32_1 = arith.constant 0 : i32
    return %c0_i32, %c0_i32_0 : i32, i32
  }
  func.func @transform_2(%arg0: i32) -> (i32, i32) {
    %c0_i32 = arith.constant 0 : i32
    %c0_i32_0 = arith.constant 0 : i32
    %c0_i32_1 = arith.constant 0 : i32
    return %c0_i32, %c0_i32_0 : i32, i32
  }
  func.func @transform_3(%arg0: i32) -> (i32, i32) {
    %c0_i32 = arith.constant 0 : i32
    %c0_i32_0 = arith.constant 0 : i32
    %c0_i32_1 = arith.constant 0 : i32
    return %c0_i32, %c0_i32_0 : i32, i32
  }
  func.func @transform_4(%arg0: i32) -> (i32, i32) {
    %c0_i32 = arith.constant 0 : i32
    %c0_i32_0 = arith.constant 0 : i32
    %c0_i32_1 = arith.constant 0 : i32
    return %c0_i32, %c0_i32_0 : i32, i32
  }
  func.func @transform_5(%arg0: i32) -> (i32, i32) {
    %c0_i32 = arith.constant 0 : i32
    %c0_i32_0 = arith.constant 0 : i32
    %c0_i32_1 = arith.constant 0 : i32
    return %c0_i32, %c0_i32_0 : i32, i32
  }
  func.func @transform_6(%arg0: i32) -> (i32, i32) {
    %c0_i32 = arith.constant 0 : i32
    %c0_i32_0 = arith.constant 0 : i32
    %c0_i32_1 = arith.constant 0 : i32
    return %c0_i32, %c0_i32_0 : i32, i32
  }
  func.func @transform_7(%arg0: i32) -> (i32, i32) {
    %c0_i32 = arith.constant 0 : i32
    %c0_i32_0 = arith.constant 0 : i32
    return %c0_i32, %arg0 : i32, i32
  }
}

</mosaic_0001>

<bundles_post_ra>
// kernel: tpu_custom_call.1
= control target key start
LH: loop header
LB: loop body
LE: loop exit
PB: predicated region body
PF: predicated region fallthrough
CT: control target
= control target key end

     0   :  { %s1142_s0 = inlined_call_operand.vmem [shape: bf16[32,384], index: 0, kind: input, shape index: {}]   ;;  %s1143_s1 = inlined_call_operand.vmem [shape: bf16[64,32], index: 1, kind: input, shape index: {}]   ;;  %s1144_s2 = inlined_call_operand.vmem [shape: f32[64,1], index: 2, kind: input, shape index: {}]   ;;  %s1145_s3 = inlined_call_operand.vmem [shape: bf16[32,64], index: 3, kind: input, shape index: {}]   ;;  %s1146_s4 = inlined_call_operand.vmem [shape: f32[32,1], index: 4, kind: input, shape index: {}]   ;;  %s1147_s5 = inlined_call_operand.vmem [shape: f32[32,1], index: 5, kind: input, shape index: {}]   ;;  %s1148_s6 = inlined_call_operand.<no memory space> [shape: f32[1,1], index: 6, kind: input, shape index: {}]   ;;  %s1149_s7 = inlined_call_operand.hbm [shape: f32[1,384], index: 7, kind: output, shape index: {}]  }
   0x1   :  { %v12_v0 = vstv %s1148_s6 }
   0x2   :  { %13 = vst [vmem:[#allocation2] sm:$0x1] %v12_v0 }
   0x3   :  { %14 = vsyncpa [#allocation5], 0 }
   0x4   :  { %16 = vsyncpa [#allocation5 + $0x1], 0  ;;  %s963_s26 = smov 0   ;;  %s965_s27 = smov 0  }
   0x5   :  { %s967_s28 = smov 0   ;;  %s969_s29 = smov 0  }
   0x6 LB: > { %s739_s6 = sadd.s32 4294967295, %s916_s29   ;;  %s740_s30 = sadd.s32 4294967294, %s916_s29   ;;  %s916_s29 = sphi %s969_s29, %s1155_s29   ;;  %s912_s28 = sphi %s967_s28, %s1154_s28   ;;  %s908_s27 = sphi %s965_s27, %s1153_s27   ;;  %s904_s26 = sphi %s963_s26, %s1152_s26  }
   0x7   : > { %s986_s8 = sadd.s32 1, %s916_s29   ;;  %s29_s9 = sadd.s32 1, %s912_s28 }
   0x8   : > { %s26_s10 = ssub.s32 %s916_s29, %s986_s8  ;;  %p36_p0 = scmp.ne.s32.totalorder %s912_s28, %s908_s27 }
   0x9   : > { %p27_p1 = scmp.eq.s32.totalorder %s26_s10, 0  ;;  %p37_p2 = scmp.eq.s32.totalorder %s916_s29, 0 }
   0xa   : > { %p192_p3 = scmp.eq.s32.totalorder %s739_s6, 2  ;;  %p197_p4 = scmp.ne.s32.totalorder %s908_s27, %s904_s26 }
   0xb   : > { %s999_s11 = scalar_select %p27_p1, %s912_s28, %s29_s9  }
   0xc   : > { %p38_p5 = por %p37_p2, %p36_p0  ;;  %p1001_p6 = por %p192_p3, %p36_p0 }
   0xd   : > { %p198_p7 = scmp.eq.s32.totalorder %s740_s30, 2  ;;  %p742_p9 = scmp.ge.s32.totalorder %s916_s29, 3 }
   0xf   : > { %p1005_p8 = por %p198_p7, %p197_p4  ;;  %232 = sbr.rel (%p742_p9) target bundleno = 29 (0x1d), region = 40 }
  0x16   : > { %235 = sbr.rel (!%p38_p5) target bundleno = 29 (0x1d), region = 44  ;;  %s237_s14 = sand.u32 (%p38_p5), 1, %s912_s28  }
  0x17   : > { %s744_s15 = sshll.u32 (%p38_p5), %s916_s29, 2  ;;  %s743_s16 = sshll.u32 (%p38_p5), %s237_s14, 4 }
  0x18   : > { %s241_s19 = scalar_lea.vmem (%p38_p5), %s1142_s0, %s744_s15  ;;  %s239_s20 = scalar_lea.vmem (%p38_p5), [#allocation3], %s743_s16 }
  0x19   : > { %v257_v1 = vld [vmem:[%s241_s19] sm:$0xf] (%p38_p5)  ;;  %v259_v2 = vld [vmem:[%s241_s19 + $0xc] sm:$0xf] (%p38_p5)  ;;  %v261_v3 = vld [vmem:[%s241_s19 + $0x18] sm:$0xf] (%p38_p5) }
  0x1a   : > { %258 = vst [vmem:[%s239_s20] sm:$0xf] (%p38_p5), %v257_v1  ;;  %260 = vst [vmem:[%s239_s20 + $0x4] sm:$0xf] (%p38_p5), %v259_v2  ;;  %v263_v4 = vld [vmem:[%s241_s19 + $0x24] sm:$0xf] (%p38_p5) }
  0x1b   : > { %262 = vst [vmem:[%s239_s20 + $0x8] sm:$0xf] (%p38_p5), %v261_v3  ;;  %264 = vst [vmem:[%s239_s20 + $0xc] sm:$0xf] (%p38_p5), %v263_v4 }
  0x1d PF: > { %p745_p10 = scmp.ge.s32.totalorder %s916_s29, 1  ;;  %p294_p11 = scmp.lt.s32.totalorder %s916_s29, 4 }
  0x1f   : > { %p295_p12 = pnand %p745_p10, %p294_p11 }
  0x20   : > { %s1018_s21 = sand.u32 (!%p295_p12), 1, %s908_s27   ;;  %v844_v5 = vld [vmem:[%s1143_s1] sm:$0xff] (!%p295_p12)   ;;  %vm424_vm0 = vcmask (!%p295_p12), 261120   ;;  %v918_v8 = vmov (!%p295_p12), 0   ;;  %v346_v10 = vld [vmem:[%s1144_s2 + $0x10] sm:$0xff] (!%p295_p12)  ;;  %v345_v11 = vld [vmem:[%s1144_s2 + $0x8] sm:$0xff] (!%p295_p12) }
  0x21   : > { %298 = sbr.rel (%p295_p12) target bundleno = 564 (0x234), region = 85  ;;  %s746_s24 = sshll.u32 (!%p295_p12), %s1018_s21, 4  ;;  %780 = vmatprep.mubr.msk.bf16.mxu0 (!%p295_p12), %vm424_vm0, %v844_v5  ;;  %840 = vset.pattern.permute.xlu0 (!%p295_p12), %v918_v8  ;;  %v344_v9 = vld [vmem:[%s1144_s2] sm:$0xff] (!%p295_p12)  ;;  %v845_v12 = vld [vmem:[%s1143_s1 + $0x8] sm:$0xff] (!%p295_p12)   ;;  %v347_v13 = vld [vmem:[%s1144_s2 + $0x18] sm:$0xff] (!%p295_p12)  ;;  %vm552_vm1 = vcmask (!%p295_p12), 523264  }
  0x22   : > { %s303_s25 = scalar_lea.vmem (!%p295_p12), [#allocation3], %s746_s24  ;;  %841 = vset.pattern.permute.xlu1 (!%p295_p12), %v918_v8  ;;  %354 = vperm.xlu0 (!%p295_p12), %840, %v344_v9   ;;  %v846_v14 = vld [vmem:[%s1143_s1 + $0x10] sm:$0xff] (!%p295_p12)   ;;  %v348_v15 = vld [vmem:[%s1144_s2 + $0x20] sm:$0xff] (!%p295_p12)  ;;  %v349_v16 = vld [vmem:[%s1144_s2 + $0x28] sm:$0xff] (!%p295_p12)  ;;  %s761_s30 = sshll.u32 (!%p295_p12), %s739_s6, 4 }
  0x23   : > { %v842_v6 = vld [vmem:[%s303_s25] sm:$0xff] (!%p295_p12)   ;;  %v843_v7 = vld [vmem:[%s303_s25 + $0x8] sm:$0xff] (!%p295_p12)   ;;  %364 = vperm.xlu1 (!%p295_p12), %841, %v346_v10   ;;  %s330_s9 = scalar_lea.vmem (!%p295_p12), [#allocation4], %s1018_s21  ;;  %s1099_s16 = scalar_lea.hbm (!%p295_p12), %s1149_s7, %s761_s30 }
  0x24   : > { %776 = vmatprep.subr.bf16.mxu0 (!%p295_p12), %v842_v6  ;;  %v350_v17 = vld [vmem:[%s1144_s2 + $0x30] sm:$0xff] (!%p295_p12)  ;;  %v847_v18 = vld [vmem:[%s1143_s1 + $0x18] sm:$0xff] (!%p295_p12)   ;;  %v518_v20 = vld [vmem:[%s1146_s4] sm:$0xff] (!%p295_p12)  ;;  %s679_s10 = sshll.u32 (!%p295_p12), %s330_s9, 4  ;;  %s667_s17 = scalar_lea.sflag (!%p295_p12), [#allocation5], %s1018_s21  ;;  %s1101_s10 = int_to_ptr.vmem [resolvable:$true] %s679_s10 }
  0x25   : > { %777 = vmatpush3.bf16.msra.mxu0 (!%p295_p12), %v842_v6  ;;  %v351_v19 = vld [vmem:[%s1144_s2 + $0x38] sm:$0xff] (!%p295_p12)  ;;  %v519_v21 = vld [vmem:[%s1146_s4 + $0x8] sm:$0xff] (!%p295_p12)  ;;  %v520_v22 = vld [vmem:[%s1146_s4 + $0x10] sm:$0xff] (!%p295_p12)  ;;  %s854_s18 = scalar_lea.vmem (!%p295_p12), %s1101_s10, 16  ;;  %s919_s6 = smov (!%p295_p12), [#allocation4]  }
  0x26   : > { %778 = vmatprep.subr.bf16.mxu0 (!%p295_p12), %v843_v7  ;;  %359 = vperm.xlu0 (!%p295_p12), %840, %v345_v11   ;;  %v521_v23 = vld [vmem:[%s1146_s4 + $0x18] sm:$0xff] (!%p295_p12)  ;;  %v612_v24 = vld [vmem:[%s1147_s5] sm:$0xff] (!%p295_p12)  ;;  %v613_v25 = vld [vmem:[%s1147_s5 + $0x8] sm:$0xff] (!%p295_p12)  ;;  %p855_p13 = scmp.ne.s32.totalorder (!%p295_p12), %s1101_s10, %s854_s18  ;;  %s858_s19 = sshll.u32 (!%p295_p12), %s919_s6, 4  ;;  %s859_s19 = int_to_ptr.vmem [resolvable:$false] %s858_s19 }
  0x27   : > { %369 = vperm.xlu1 (!%p295_p12), %841, %v347_v13   ;;  %v614_v26 = vld [vmem:[%s1147_s5 + $0x10] sm:$0xff] (!%p295_p12)  ;;  %v615_v27 = vld [vmem:[%s1147_s5 + $0x18] sm:$0xff] (!%p295_p12)  ;;  %v649_v28 = vld [vmem:[#allocation2] sm:$0x1] (!%p295_p12)  ;;  %s860_s20 = scalar_lea.vmem (!%p295_p12), %s859_s19, 32  ;;  %p861_p2 = scmp.lt.s32.totalorder (!%p295_p12), %s1101_s10, %s859_s19 }
  0x28   : > { %v848_v29 = vld [vmem:[%s1145_s3] sm:$0xff]   ;;  %v849_v2 = vld [vmem:[%s1145_s3 + $0x8] sm:$0xff]   ;;  %p856_p0 = pnand %p855_p13, %p1001_p6  ;;  %p862_p3 = scmp.lt.s32.totalorder %s860_s20, %s854_s18 }
  0x29   : > { %779 = vmatpush3.bf16.msra.mxu0 %v843_v7  ;;  %796 = vmatprep.mubr.msk.bf16.mxu1 %vm552_vm1, %v848_v29  ;;  %v655_v29 = vlaneseq }
  0x2a   : > { %374 = vperm.xlu0 %840, %v348_v15   ;;  %p857_p1 = pneg %p856_p0  ;;  %p863_p4 = por %p862_p3, %p861_p2 }
  0x2b   : > { %379 = vperm.xlu1 %841, %v349_v16  }
  0x2c   : > { %781 = vmatmul.mubr.msk.bf16.vlgmr.msra.gmra.mrb[0].mxu0 %vm424_vm0, %v845_v12  ;;  %p864_p5 = pnand %p863_p4, %p857_p1 }
  0x2d   : > { %784 = vmatprep.mubr.msk.bf16.mxu0 %vm424_vm0, %v846_v14 }
  0x2e   : > { %384 = vperm.xlu0 %840, %v350_v17  }
  0x2f   : > { %389 = vperm.xlu1 %841, %v351_v19  }
  0x32   : > { %524 = vperm.xlu0 %840, %v518_v20  }
  0x33   : > { %529 = vperm.xlu1 %841, %v519_v21  }
  0x34   : > { %785 = vmatmul.mubr.msk.bf16.gmra.mrb[4].mxu0 %vm424_vm0, %v847_v18 }
  0x36   : > { %534 = vperm.xlu0 %840, %v520_v22  }
  0x37   : > { %539 = vperm.xlu1 %841, %v521_v23  }
  0x3a   : > { %618 = vperm.xlu0 %840, %v612_v24  }
  0x3b   : > { %623 = vperm.xlu1 %841, %v613_v25  }
  0x3e   : > { %628 = vperm.xlu0 %840, %v614_v26  }
  0x3f   : > { %633 = vperm.xlu1 %841, %v615_v27  }
  0x42   : > { %652 = vperm.xlu0 %840, %v649_v28  }
  0xa1   : > { %v355_v30 = vpop.permute.xlu0 %354 }
  0xa2   : > { %v365_v31 = vpop.permute.xlu1 %364 }
  0xa5   : > { %v360_v32 = vpop.permute.xlu0 %359 }
  0xa6   : > { %v370_v33 = vpop.permute.xlu1 %369 }
  0xa9   : > { %v375_v37 = vpop.permute.xlu0 %374 }
  0xaa   : > { %v380_v42 = vpop.permute.xlu1 %379 }
  0xad   : > { %v385_v49 = vpop.permute.xlu0 %384 }
  0xae   : > { %v390_v54 = vpop.permute.xlu1 %389 }
  0xb1   : > { %v525_v3 = vpop.permute.xlu0 %524 }
  0xb2   : > { %v530_v4 = vpop.permute.xlu1 %529 }
  0xb5   : > { %v535_v5 = vpop.permute.xlu0 %534 }
  0xb6   : > { %v540_v6 = vpop.permute.xlu1 %539 }
  0xb9   : > { %v619_v12 = vpop.permute.xlu0 %618 }
  0xba   : > { %v624_v17 = vpop.permute.xlu1 %623 }
  0xbd   : > { %v629_v23 = vpop.permute.xlu0 %628 }
  0xbe   : > { %v634_v26 = vpop.permute.xlu1 %633 }
  0xff   : > { %v782_v34 = vpop.f32.mrb[0].mxu0 }
 0x100   : > { %v480_v35 = vadd.f32 %v782_v34, %v365_v31  ;;  %v471_v36 = vpop.f32.mrb[1].mxu0 }
 0x101   : > { %v472_v38 = vadd.f32 %v471_v36, %v355_v30  ;;  %v783_v39 = vpop.f32.mrb[2].mxu0 }
 0x102   : > { %v483_v40 = vadd.f32 %v783_v39, %v370_v33  ;;  %v474_v41 = vpop.f32.mrb[3].mxu0  ;;  %v504_v44 = vmax.f32 %v480_v35, 0.0 }
 0x103   : > { %v475_v43 = vadd.f32 %v474_v41, %v360_v32  ;;  %v502_v46 = vmax.f32 %v472_v38, 0.0  ;;  %v656_v32 = vshrl.u32 %v655_v29, 7 }
 0x104   : > { %v505_v45 = vmax.f32 %v483_v40, 0.0 }
 0x105   : > { %v503_v47 = vmax.f32 %v475_v43, 0.0  ;;  %v657_v35 = vsub.s32 0, %v656_v32 }
 0x106   : > { %v515_v48 = vpack.c.bf16 %v505_v45, %v504_v44 }
 0x107   : > { %v786_v50 = vpop.f32.mrb[4].mxu0  ;;  %v514_v51 = vpack.c.bf16 %v503_v47, %v502_v46 }
 0x108   : > { %v496_v52 = vadd.f32 %v786_v50, %v385_v49  ;;  %v487_v53 = vpop.f32.mrb[5].mxu0 }
 0x109   : > { %v488_v55 = vadd.f32 %v487_v53, %v375_v37  ;;  %v787_v56 = vpop.f32.mrb[6].mxu0  ;;  %788 = vmatprep.subr.bf16.mxu1 %v514_v51  ;;  %v653_v37 = vpop.permute.xlu0 %652 }
 0x10a   : > { %v499_v57 = vadd.f32 %v787_v56, %v390_v54  ;;  %v490_v58 = vpop.f32.mrb[7].mxu0  ;;  %789 = vmatpush3.bf16.msra.mxu1 %v514_v51  ;;  %v508_v60 = vmax.f32 %v496_v52, 0.0  ;;  %v658_v39 = vrot.slane %v653_v37, %v657_v35 }
 0x10b   : > { %v491_v59 = vadd.f32 %v490_v58, %v380_v42  ;;  %790 = vmatprep.subr.bf16.mxu1 %v515_v48  ;;  %v506_v62 = vmax.f32 %v488_v55, 0.0 }
 0x10c   : > { %v509_v61 = vmax.f32 %v499_v57, 0.0 }
 0x10d   : > { %v507_v63 = vmax.f32 %v491_v59, 0.0 }
 0x10e   : > { %v517_v0 = vpack.c.bf16 %v509_v61, %v508_v60  ;;  %791 = vmatpush3.bf16.msra.mxu1 %v515_v48 }
 0x10f   : > { %v516_v1 = vpack.c.bf16 %v507_v63, %v506_v62 }
 0x111   : > { %792 = vmatprep.subr.bf16.mxu1 %v516_v1 }
 0x112   : > { %793 = vmatpush3.bf16.msra.mxu1 %v516_v1 }
 0x113   : > { %794 = vmatprep.subr.bf16.mxu1 %v517_v0 }
 0x116   : > { %795 = vmatpush3.bf16.msra.mxu1 %v517_v0 }
 0x119   : > { %797 = vmatmul.mubr.msk.bf16.vlgmr.msra.gmra.mrb[0].mxu1 %vm552_vm1, %v849_v2 }
 0x1ec   : > { %v798_v7 = vpop.f32.mrb[0].mxu1 }
 0x1ed   : > { %v593_v8 = vpop.f32.mrb[1].mxu1  ;;  %v602_v9 = vadd.f32 %v798_v7, %v535_v5 }
 0x1ee   : > { %v594_v10 = vadd.f32 %v593_v8, %v525_v3  ;;  %v799_v11 = vpop.f32.mrb[2].mxu1 }
 0x1ef   : > { %v596_v13 = vpop.f32.mrb[3].mxu1  ;;  %v605_v15 = vadd.f32 %v799_v11, %v540_v6  ;;  %v610_v18 = vmax.f32 %v602_v9, 0.0 }
 0x1f0   : > { %v608_v14 = vmax.f32 %v594_v10, 0.0  ;;  %v597_v16 = vadd.f32 %v596_v13, %v530_v4 }
 0x1f1   : > { %v611_v21 = vmax.f32 %v605_v15, 0.0  ;;  %v638_v24 = vmul.f32 %v629_v23, %v610_v18 }
 0x1f2   : > { %v609_v19 = vmax.f32 %v597_v16, 0.0  ;;  %v636_v20 = vmul.f32 %v619_v12, %v608_v14 }
 0x1f3   : > { %v639_v27 = vmul.f32 %v634_v26, %v611_v21 }
 0x1f4   : > { %v637_v22 = vmul.f32 %v624_v17, %v609_v19 }
 0x1f6   : > { %v640_v25 = vadd.f32 %v637_v22, %v636_v20 }
 0x1f8   : > { %v641_v28 = vadd.f32 %v640_v25, %v638_v24 }
 0x1fa   : > { %v642_v30 = vadd.f32 %v641_v28, %v639_v27 }
 0x1fc   : > { %v643_v31 = vrot.slane %v642_v30, 4 }
 0x1fe   : > { %v644_v33 = vadd.f32 %v643_v31, %v642_v30 }
 0x200   : > { %v645_v34 = vrot.slane %v644_v33, 2 }
 0x202   : > { %v646_v36 = vadd.f32 %v645_v34, %v644_v33 }
 0x204   : > { %v647_v38 = vrot.slane %v646_v36, 1 }
 0x206   : > { %v648_v40 = vadd.f32 %v647_v38, %v646_v36 }
 0x208   : > { %v659_v41 = vadd.f32 %v658_v39, %v648_v40 }
 0x20a   : > { %v660_v42 = vsub.f32 0.0, %v659_v41 }
 0x20c   : > { %v661_v43 = vmul.f32 1.442695, %v660_v42 }
 0x20e   : > { %850 = vpow2.f32 %v661_v43 }
 0x218   : > { %v851_v44 = vpop.eup %850 }
 0x219   : > { %v663_v45 = vadd.f32 1.0, %v851_v44 }
 0x21b   : > { %852 = vrcp.f32 %v663_v45 }
 0x225   : > { %v853_v46 = vpop.eup %852 }
 0x226   : > { %665 = vst [vmem:[%s330_s9] sm:$0x1] %v853_v46 }
 0x227   : > { %867 = shalt.err (!%p864_p5)
}
 0x228   : > { %s868_s21 = scalar_lea.hbm %s1099_s16, 16  ;;  %s872_s24 = scalar_lea.hbm %s1149_s7, 48 }
 0x229   : > { %p869_p7 = scmp.ne.s32.totalorder %s1099_s16, %s868_s21  ;;  %p873_p11 = scmp.lt.u32.totalorder %s1099_s16, %s1149_s7 }
 0x22a   : > { %p874_p12 = scmp.lt.u32.totalorder %s872_s24, %s868_s21  ;;  %p876_p0 = scmp.lt.u32.totalorder %s868_s21, %s1099_s16 }
 0x22b   : > { %p870_p9 = pnand %p869_p7, %p1001_p6 }
 0x22c   : > { %p875_p13 = por %p874_p12, %p873_p11 }
 0x22d   : > { %p871_p10 = pneg %p870_p9 }
 0x22e   : > { %p877_p1 = por %p876_p0, %p875_p13 }
 0x230   : > { %p878_p2 = pnand %p877_p1, %p871_p10 }
 0x232   : > { %881 = shalt.err (!%p878_p2)
}
 0x233   : > { %800 = dma.vmem_to_hbm [thread:$0]  (%p1001_p6), %s1101_s10, 16, %s1099_s16, %s667_s17  }
 0x234 PF: > { %p806_p3 = scmp.ge.s32.totalorder %s916_s29, 2  ;;  %s691_s9 = sand.u32 1, %s904_s26  }
 0x235   : > { %s692_s14 = scalar_lea.sflag [#allocation5], %s691_s9 }
 0x236   : > { %p803_p4 = pnand %p806_p3, %p1005_p8 }
 0x238   : > { %899 = dma.done.wait (!%p803_p4), %s692_s14, 16  }
 0x239   : > { %901 = vsyncadd (!%p803_p4), %s692_s14, 4294967280  ;;  %p19_p5 = scmp.ge.s32.totalorder %s986_s8, 5   ;;  %s1152_s26 = smov %s908_s27 }
 0x23a   : > { %s1153_s27 = smov %s912_s28  ;;  %s1154_s28 = smov %s999_s11 }
 0x23b   : > { %s1155_s29 = smov %s986_s8  ;;  %21 = sbr.rel (!%p19_p5) target bundleno = 6 (0x6), region = 129 }
 0x242   :  { %696 = vsyncpa [#allocation5], 1 }
 0x243   :  { %698 = vsyncpa [#allocation5 + $0x1], 1 }

</bundles_post_ra>
